<compile_context>
chip_gen: v5e
topology: v5e:2x2
jax: 0.10.0
libtpu: 0.0.40
codegen_flags: <defaults>
</compile_context>

<pallas_src>
import functools
from math import sqrt

import jax
import jax.numpy as jnp
from jax import lax
from jax.experimental import pallas as pl
from jax.experimental.pallas import tpu as pltpu


# -----------------------------------------------------------------------------
# Pallas kernel
# -----------------------------------------------------------------------------
def _xlstm_kernel(x_ref,             # (T*B, I)   time-major rows
                  w_ih_ref,          # (I, 4H)    gate cols permuted [i,f,o,g]
                  w_hh_ref,          # (H, 4H)    gate cols permuted [i,f,o,g]
                  bsum_ref,          # (1, 4H)    b_ih + b_hh, permuted
                  wg_ref, bg_ref,    # (H, H), (1, H)
                  wm_ref, bm_ref,    # (H, H), (1, H)
                  w1_ref, b1_ref,    # (H, 7), (1, 7)
                  w2_ref, b2_ref,    # (7, O), (1, O)
                  out_ref,           # (T*B, O)
                  gin_ref,           # VMEM scratch (T*B, 4H)
                  h_hist_ref,        # VMEM scratch (T*B, H)
                  *, seq_len, batch):
    H = w_hh_ref.shape[0]
    B = batch

    # ---- Hoisted weight loads (stay resident across the recurrence) --------
    w_hh = w_hh_ref[...]
    wg, bg = wg_ref[...], bg_ref[...]
    wm, bm = wm_ref[...], bm_ref[...]
    w1, b1 = w1_ref[...], b1_ref[...]
    w2, b2 = w2_ref[...], b2_ref[...]

    # ---- (1) Input projection for ALL timesteps, outside the recurrence ----
    gin_ref[...] = (jnp.dot(x_ref[...], w_ih_ref[...],
                            preferred_element_type=jnp.float32)
                    + bsum_ref[...])                       # (T*B, 4H)

    # ---- (2) Serial LSTM recurrence: only h @ W_hh + activations per step --
    def step(t, carry):
        h, c = carry                                       # (B, H), (B, H)
        row = t * B
        gates = (gin_ref[pl.ds(row, B), :]
                 + jnp.dot(h, w_hh, preferred_element_type=jnp.float32))
        # gate columns are [i, f, o | g]: one sigmoid + one tanh
        s = jax.nn.sigmoid(gates[:, :3 * H])
        g_g = jnp.tanh(gates[:, 3 * H:])
        i_g = s[:, 0 * H:1 * H]
        f_g = s[:, 1 * H:2 * H]
        o_g = s[:, 2 * H:3 * H]

        c_new = f_g * c + i_g * g_g
        h_new = o_g * jnp.tanh(c_new)                      # lstm_out at step t
        h_hist_ref[pl.ds(row, B), :] = h_new
        return h_new, c_new

    h0 = jnp.zeros((B, H), jnp.float32)
    c0 = jnp.zeros((B, H), jnp.float32)
    lax.fori_loop(0, seq_len, step, (h0, c0), unroll=True)

    # ---- (3) Head applied once over all T*B rows; single dense store -------
    hs = h_hist_ref[...]                                   # (T*B, H)
    gate_out = jax.nn.sigmoid(
        jnp.dot(hs, wg, preferred_element_type=jnp.float32) + bg)
    memory_out = (jnp.dot(gate_out * hs, wm,
                          preferred_element_type=jnp.float32) + bm)
    z = jnp.maximum(
        jnp.dot(memory_out, w1, preferred_element_type=jnp.float32) + b1, 0.0)
    out_ref[...] = (jnp.dot(z, w2, preferred_element_type=jnp.float32) + b2)


# -----------------------------------------------------------------------------
# Wrapper
# -----------------------------------------------------------------------------
@jax.jit
def xlstm_forward(x, params):
    """x: (B, T, I) float32 -> (B, T, O) float32."""
    B, T, I = x.shape
    H = params["w_hh"].shape[0]
    O = params["w2"].shape[1]

    # Permute LSTM gate columns from PyTorch order [i, f, g, o] to [i, f, o, g]
    # so the kernel applies one sigmoid over the first 3H columns and one tanh
    # over the last H.  Free at trace time; applied consistently to all three.
    perm = jnp.concatenate([jnp.arange(0, 2 * H),
                            jnp.arange(3 * H, 4 * H),
                            jnp.arange(2 * H, 3 * H)])
    w_ih = params["w_ih"][:, perm]
    w_hh = params["w_hh"][:, perm]
    bsum = (params["b_ih"] + params["b_hh"])[:, perm]      # pre-summed bias

    # Time-major flattened rows: row index = t*B + b.
    x_flat = jnp.transpose(x, (1, 0, 2)).reshape(T * B, I)

    kernel = functools.partial(_xlstm_kernel, seq_len=T, batch=B)
    out_flat = pl.pallas_call(
        kernel,
        out_shape=jax.ShapeDtypeStruct((T * B, O), jnp.float32),
        scratch_shapes=[
            pltpu.VMEM((T * B, 4 * H), jnp.float32),       # gates_in
            pltpu.VMEM((T * B, H), jnp.float32),           # h history
        ],
    )(x_flat, w_ih, w_hh, bsum,
      params["wg"], params["bg"],
      params["wm"], params["bm"],
      params["w1"], params["b1"],
      params["w2"], params["b2"])

    return jnp.transpose(out_flat.reshape(T, B, O), (1, 0, 2))   # (B, T, O)


# -----------------------------------------------------------------------------
# Deterministic parameter construction (shapes from nn.Module __init__)
# -----------------------------------------------------------------------------
def init_params(key, input_size=1, hidden_size=6, output_size=1):
    H, I, O = hidden_size, input_size, output_size
    keys = jax.random.split(key, 13)
    u = lambda k, shape, bound: jax.random.uniform(
        k, shape, jnp.float32, -bound, bound)

    kb = 1.0 / sqrt(H)
    params = {
        # LSTM weights stored transposed: (in, 4H), PyTorch gate order i,f,g,o
        "w_ih": u(keys[0], (I, 4 * H), kb),
        "w_hh": u(keys[1], (H, 4 * H), kb),
        "b_ih": u(keys[2], (1, 4 * H), kb),
        "b_hh": u(keys[3], (1, 4 * H), kb),
        # gate: Linear(H, H)
        "wg": u(keys[4], (H, H), kb),
        "bg": u(keys[5], (1, H), kb),
        # memory_cell: Linear(H, H)
        "wm": u(keys[6], (H, H), kb),
        "bm": u(keys[7], (1, H), kb),
        # fc1: Linear(H, 7)
        "w1": u(keys[8], (H, 7), kb),
        "b1": u(keys[9], (1, 7), kb),
        # fc2: Linear(7, O)
        "w2": u(keys[10], (7, O), 1.0 / sqrt(7)),
        "b2": u(keys[11], (1, O), 1.0 / sqrt(7)),
    }
    return params


# -----------------------------------------------------------------------------
# Pure-JAX reference (mirrors the PyTorch forward) for a correctness check
# -----------------------------------------------------------------------------
def xlstm_reference(x, params):
    B, T, _ = x.shape
    H = params["w_hh"].shape[0]

    def cell(carry, x_t):
        h, c = carry
        gates = (x_t @ params["w_ih"] + h @ params["w_hh"]
                 + params["b_ih"][0] + params["b_hh"][0])
        i_g = jax.nn.sigmoid(gates[:, 0 * H:1 * H])
        f_g = jax.nn.sigmoid(gates[:, 1 * H:2 * H])
        g_g = jnp.tanh(gates[:, 2 * H:3 * H])
        o_g = jax.nn.sigmoid(gates[:, 3 * H:4 * H])
        c_new = f_g * c + i_g * g_g
        h_new = o_g * jnp.tanh(c_new)
        return (h_new, c_new), h_new

    h0 = jnp.zeros((B, H), jnp.float32)
    c0 = jnp.zeros((B, H), jnp.float32)
    _, hs = lax.scan(cell, (h0, c0), jnp.transpose(x, (1, 0, 2)))
    lstm_out = jnp.transpose(hs, (1, 0, 2))            # (B, T, H)

    gate_out = jax.nn.sigmoid(lstm_out @ params["wg"] + params["bg"][0])
    memory_out = (gate_out * lstm_out) @ params["wm"] + params["bm"][0]
    z = jnp.maximum(memory_out @ params["w1"] + params["b1"][0], 0.0)
    return z @ params["w2"] + params["b2"][0]


if __name__ == "__main__":
    key = jax.random.PRNGKey(0)
    k_param, k_x = jax.random.split(key)

    B, T, I = 2, 8, 1                                  # batch=2, seq=8, input_size=1
    params = init_params(k_param, input_size=I, hidden_size=6, output_size=1)
    x = jax.random.normal(k_x, (B, T, I), jnp.float32)

    out = xlstm_forward(x, params)
    out = jax.block_until_ready(out)

    ref = xlstm_reference(x, params)
    assert out.shape == (B, T, 1), out.shape
    assert jnp.allclose(out, ref, rtol=1e-3, atol=1e-3), (
        f"max abs diff {jnp.max(jnp.abs(out - ref))}")

    print("KERNEL_OK")
</pallas_src>

<mosaic_0001>
module attributes {stable_mosaic.version = 11 : i64} {
  func.func @_xlstm_kernel(%arg0: memref<16x1xf32, #tpu.memory_space<vmem>>, %arg1: memref<1x24xf32, #tpu.memory_space<vmem>>, %arg2: memref<6x24xf32, #tpu.memory_space<vmem>>, %arg3: memref<1x24xf32, #tpu.memory_space<vmem>>, %arg4: memref<6x6xf32, #tpu.memory_space<vmem>>, %arg5: memref<1x6xf32, #tpu.memory_space<vmem>>, %arg6: memref<6x6xf32, #tpu.memory_space<vmem>>, %arg7: memref<1x6xf32, #tpu.memory_space<vmem>>, %arg8: memref<6x7xf32, #tpu.memory_space<vmem>>, %arg9: memref<1x7xf32, #tpu.memory_space<vmem>>, %arg10: memref<7x1xf32, #tpu.memory_space<vmem>>, %arg11: memref<1x1xf32, #tpu.memory_space<vmem>>, %arg12: memref<16x1xf32, #tpu.memory_space<vmem>>, %arg13: memref<16x24xf32, #tpu.memory_space<vmem>>, %arg14: memref<16x6xf32, #tpu.memory_space<vmem>>) attributes {dimension_semantics = [], scalar_prefetch = 0 : i64, scratch_operands = 2 : i64, tpu.core_type = #tpu.core_type<tc>} {
    %c0 = arith.constant 0 : index
    %c0_0 = arith.constant 0 : index
    %0 = vector.load %arg2[%c0, %c0_0] : memref<6x24xf32, #tpu.memory_space<vmem>>, vector<6x24xf32>
    %c0_1 = arith.constant 0 : index
    %c0_2 = arith.constant 0 : index
    %1 = vector.load %arg4[%c0_1, %c0_2] : memref<6x6xf32, #tpu.memory_space<vmem>>, vector<6x6xf32>
    %c0_3 = arith.constant 0 : index
    %c0_4 = arith.constant 0 : index
    %2 = vector.load %arg5[%c0_3, %c0_4] : memref<1x6xf32, #tpu.memory_space<vmem>>, vector<1x6xf32>
    %c0_5 = arith.constant 0 : index
    %c0_6 = arith.constant 0 : index
    %3 = vector.load %arg6[%c0_5, %c0_6] : memref<6x6xf32, #tpu.memory_space<vmem>>, vector<6x6xf32>
    %c0_7 = arith.constant 0 : index
    %c0_8 = arith.constant 0 : index
    %4 = vector.load %arg7[%c0_7, %c0_8] : memref<1x6xf32, #tpu.memory_space<vmem>>, vector<1x6xf32>
    %c0_9 = arith.constant 0 : index
    %c0_10 = arith.constant 0 : index
    %5 = vector.load %arg8[%c0_9, %c0_10] : memref<6x7xf32, #tpu.memory_space<vmem>>, vector<6x7xf32>
    %c0_11 = arith.constant 0 : index
    %c0_12 = arith.constant 0 : index
    %6 = vector.load %arg9[%c0_11, %c0_12] : memref<1x7xf32, #tpu.memory_space<vmem>>, vector<1x7xf32>
    %c0_13 = arith.constant 0 : index
    %c0_14 = arith.constant 0 : index
    %7 = vector.load %arg10[%c0_13, %c0_14] : memref<7x1xf32, #tpu.memory_space<vmem>>, vector<7x1xf32>
    %c0_15 = arith.constant 0 : index
    %c0_16 = arith.constant 0 : index
    %8 = vector.load %arg11[%c0_15, %c0_16] : memref<1x1xf32, #tpu.memory_space<vmem>>, vector<1x1xf32>
    %c0_17 = arith.constant 0 : index
    %c0_18 = arith.constant 0 : index
    %9 = vector.load %arg0[%c0_17, %c0_18] : memref<16x1xf32, #tpu.memory_space<vmem>>, vector<16x1xf32>
    %c0_19 = arith.constant 0 : index
    %c0_20 = arith.constant 0 : index
    %10 = vector.load %arg1[%c0_19, %c0_20] : memref<1x24xf32, #tpu.memory_space<vmem>>, vector<1x24xf32>
    %cst = arith.constant dense<0.000000e+00> : vector<16x24xf32>
    %11 = tpu.matmul %9, %10, %cst {dimension_numbers = #tpu.dot_dimension_numbers<[1], [0], [0], [1], [0, 0, 1, 1], [], []>} : vector<16x1xf32>, vector<1x24xf32>, vector<16x24xf32> -> vector<16x24xf32>
    %c0_21 = arith.constant 0 : index
    %c0_22 = arith.constant 0 : index
    %12 = vector.load %arg3[%c0_21, %c0_22] : memref<1x24xf32, #tpu.memory_space<vmem>>, vector<1x24xf32>
    %13 = vector.broadcast %12 : vector<1x24xf32> to vector<16x24xf32>
    %14 = arith.addf %11, %13 : vector<16x24xf32>
    %c0_23 = arith.constant 0 : index
    %c0_24 = arith.constant 0 : index
    %15 = vector.load %arg13[%c0_23, %c0_24] : memref<16x24xf32, #tpu.memory_space<vmem>>, vector<16x24xf32>
    tpu.vector_store %arg13[%c0_23, %c0_24], %14 {strides = array<i32>} : memref<16x24xf32, #tpu.memory_space<vmem>>, vector<16x24xf32>,
    %cst_25 = arith.constant 0.000000e+00 : f32
    %16 = vector.broadcast %cst_25 : f32 to vector<2x6xf32>
    %cst_26 = arith.constant 0.000000e+00 : f32
    %17 = vector.broadcast %cst_26 : f32 to vector<2x6xf32>
    %c0_i32 = arith.constant 0 : i32
    %c2_i32 = arith.constant 2 : i32
    %18 = arith.muli %c0_i32, %c2_i32 : i32
    %19 = arith.index_cast %18 : i32 to index
    %c0_27 = arith.constant 0 : index
    %20 = vector.load %arg13[%19, %c0_27] : memref<16x24xf32, #tpu.memory_space<vmem>>, vector<2x24xf32>
    %cst_28 = arith.constant dense<0.000000e+00> : vector<2x24xf32>
    %21 = tpu.matmul %16, %0, %cst_28 {dimension_numbers = #tpu.dot_dimension_numbers<[1], [0], [0], [1], [0, 0, 1, 1], [], []>} : vector<2x6xf32>, vector<6x24xf32>, vector<2x24xf32> -> vector<2x24xf32>
    %22 = arith.addf %20, %21 : vector<2x24xf32>
    %23 = vector.extract_strided_slice %22 {offsets = [0, 0], sizes = [2, 18], strides = [1, 1]} : vector<2x24xf32> to vector<2x18xf32>
    %24 = arith.negf %23 : vector<2x18xf32>
    %25 = math.exp %24 : vector<2x18xf32>
    %cst_29 = arith.constant 1.000000e+00 : f32
    %26 = vector.broadcast %cst_29 : f32 to vector<2x18xf32>
    %27 = arith.addf %26, %25 : vector<2x18xf32>
    %28 = arith.divf %26, %27 : vector<2x18xf32>
    %29 = vector.extract_strided_slice %22 {offsets = [0, 18], sizes = [2, 6], strides = [1, 1]} : vector<2x24xf32> to vector<2x6xf32>
    %30 = math.tanh %29 : vector<2x6xf32>
    %31 = vector.extract_strided_slice %28 {offsets = [0, 0], sizes = [2, 6], strides = [1, 1]} : vector<2x18xf32> to vector<2x6xf32>
    %32 = vector.extract_strided_slice %28 {offsets = [0, 6], sizes = [2, 6], strides = [1, 1]} : vector<2x18xf32> to vector<2x6xf32>
    %33 = vector.extract_strided_slice %28 {offsets = [0, 12], sizes = [2, 6], strides = [1, 1]} : vector<2x18xf32> to vector<2x6xf32>
    %34 = arith.mulf %32, %17 : vector<2x6xf32>
    %35 = arith.mulf %31, %30 : vector<2x6xf32>
    %36 = arith.addf %34, %35 : vector<2x6xf32>
    %37 = math.tanh %36 : vector<2x6xf32>
    %38 = arith.mulf %33, %37 : vector<2x6xf32>
    %39 = arith.index_cast %18 : i32 to index
    %c0_30 = arith.constant 0 : index
    %40 = vector.load %arg14[%39, %c0_30] : memref<16x6xf32, #tpu.memory_space<vmem>>, vector<2x6xf32>
    tpu.vector_store %arg14[%39, %c0_30], %38 {strides = array<i32>} : memref<16x6xf32, #tpu.memory_space<vmem>>, vector<2x6xf32>,
    %c1_i32 = arith.constant 1 : i32
    %c2_i32_31 = arith.constant 2 : i32
    %41 = arith.muli %c1_i32, %c2_i32_31 : i32
    %42 = arith.index_cast %41 : i32 to index
    %c0_32 = arith.constant 0 : index
    %43 = vector.load %arg13[%42, %c0_32] : memref<16x24xf32, #tpu.memory_space<vmem>>, vector<2x24xf32>
    %cst_33 = arith.constant dense<0.000000e+00> : vector<2x24xf32>
    %44 = tpu.matmul %38, %0, %cst_33 {dimension_numbers = #tpu.dot_dimension_numbers<[1], [0], [0], [1], [0, 0, 1, 1], [], []>} : vector<2x6xf32>, vector<6x24xf32>, vector<2x24xf32> -> vector<2x24xf32>
    %45 = arith.addf %43, %44 : vector<2x24xf32>
    %46 = vector.extract_strided_slice %45 {offsets = [0, 0], sizes = [2, 18], strides = [1, 1]} : vector<2x24xf32> to vector<2x18xf32>
    %47 = arith.negf %46 : vector<2x18xf32>
    %48 = math.exp %47 : vector<2x18xf32>
    %cst_34 = arith.constant 1.000000e+00 : f32
    %49 = vector.broadcast %cst_34 : f32 to vector<2x18xf32>
    %50 = arith.addf %49, %48 : vector<2x18xf32>
    %51 = arith.divf %49, %50 : vector<2x18xf32>
    %52 = vector.extract_strided_slice %45 {offsets = [0, 18], sizes = [2, 6], strides = [1, 1]} : vector<2x24xf32> to vector<2x6xf32>
    %53 = math.tanh %52 : vector<2x6xf32>
    %54 = vector.extract_strided_slice %51 {offsets = [0, 0], sizes = [2, 6], strides = [1, 1]} : vector<2x18xf32> to vector<2x6xf32>
    %55 = vector.extract_strided_slice %51 {offsets = [0, 6], sizes = [2, 6], strides = [1, 1]} : vector<2x18xf32> to vector<2x6xf32>
    %56 = vector.extract_strided_slice %51 {offsets = [0, 12], sizes = [2, 6], strides = [1, 1]} : vector<2x18xf32> to vector<2x6xf32>
    %57 = arith.mulf %55, %36 : vector<2x6xf32>
    %58 = arith.mulf %54, %53 : vector<2x6xf32>
    %59 = arith.addf %57, %58 : vector<2x6xf32>
    %60 = math.tanh %59 : vector<2x6xf32>
    %61 = arith.mulf %56, %60 : vector<2x6xf32>
    %62 = arith.index_cast %41 : i32 to index
    %c0_35 = arith.constant 0 : index
    %63 = vector.load %arg14[%62, %c0_35] : memref<16x6xf32, #tpu.memory_space<vmem>>, vector<2x6xf32>
    tpu.vector_store %arg14[%62, %c0_35], %61 {strides = array<i32>} : memref<16x6xf32, #tpu.memory_space<vmem>>, vector<2x6xf32>,
    %c2_i32_36 = arith.constant 2 : i32
    %c2_i32_37 = arith.constant 2 : i32
    %64 = arith.muli %c2_i32_36, %c2_i32_37 : i32
    %65 = arith.index_cast %64 : i32 to index
    %c0_38 = arith.constant 0 : index
    %66 = vector.load %arg13[%65, %c0_38] : memref<16x24xf32, #tpu.memory_space<vmem>>, vector<2x24xf32>
    %cst_39 = arith.constant dense<0.000000e+00> : vector<2x24xf32>
    %67 = tpu.matmul %61, %0, %cst_39 {dimension_numbers = #tpu.dot_dimension_numbers<[1], [0], [0], [1], [0, 0, 1, 1], [], []>} : vector<2x6xf32>, vector<6x24xf32>, vector<2x24xf32> -> vector<2x24xf32>
    %68 = arith.addf %66, %67 : vector<2x24xf32>
    %69 = vector.extract_strided_slice %68 {offsets = [0, 0], sizes = [2, 18], strides = [1, 1]} : vector<2x24xf32> to vector<2x18xf32>
    %70 = arith.negf %69 : vector<2x18xf32>
    %71 = math.exp %70 : vector<2x18xf32>
    %cst_40 = arith.constant 1.000000e+00 : f32
    %72 = vector.broadcast %cst_40 : f32 to vector<2x18xf32>
    %73 = arith.addf %72, %71 : vector<2x18xf32>
    %74 = arith.divf %72, %73 : vector<2x18xf32>
    %75 = vector.extract_strided_slice %68 {offsets = [0, 18], sizes = [2, 6], strides = [1, 1]} : vector<2x24xf32> to vector<2x6xf32>
    %76 = math.tanh %75 : vector<2x6xf32>
    %77 = vector.extract_strided_slice %74 {offsets = [0, 0], sizes = [2, 6], strides = [1, 1]} : vector<2x18xf32> to vector<2x6xf32>
    %78 = vector.extract_strided_slice %74 {offsets = [0, 6], sizes = [2, 6], strides = [1, 1]} : vector<2x18xf32> to vector<2x6xf32>
    %79 = vector.extract_strided_slice %74 {offsets = [0, 12], sizes = [2, 6], strides = [1, 1]} : vector<2x18xf32> to vector<2x6xf32>
    %80 = arith.mulf %78, %59 : vector<2x6xf32>
    %81 = arith.mulf %77, %76 : vector<2x6xf32>
    %82 = arith.addf %80, %81 : vector<2x6xf32>
    %83 = math.tanh %82 : vector<2x6xf32>
    %84 = arith.mulf %79, %83 : vector<2x6xf32>
    %85 = arith.index_cast %64 : i32 to index
    %c0_41 = arith.constant 0 : index
    %86 = vector.load %arg14[%85, %c0_41] : memref<16x6xf32, #tpu.memory_space<vmem>>, vector<2x6xf32>
    tpu.vector_store %arg14[%85, %c0_41], %84 {strides = array<i32>} : memref<16x6xf32, #tpu.memory_space<vmem>>, vector<2x6xf32>,
    %c3_i32 = arith.constant 3 : i32
    %c2_i32_42 = arith.constant 2 : i32
    %87 = arith.muli %c3_i32, %c2_i32_42 : i32
    %88 = arith.index_cast %87 : i32 to index
    %c0_43 = arith.constant 0 : index
    %89 = vector.load %arg13[%88, %c0_43] : memref<16x24xf32, #tpu.memory_space<vmem>>, vector<2x24xf32>
    %cst_44 = arith.constant dense<0.000000e+00> : vector<2x24xf32>
    %90 = tpu.matmul %84, %0, %cst_44 {dimension_numbers = #tpu.dot_dimension_numbers<[1], [0], [0], [1], [0, 0, 1, 1], [], []>} : vector<2x6xf32>, vector<6x24xf32>, vector<2x24xf32> -> vector<2x24xf32>
    %91 = arith.addf %89, %90 : vector<2x24xf32>
    %92 = vector.extract_strided_slice %91 {offsets = [0, 0], sizes = [2, 18], strides = [1, 1]} : vector<2x24xf32> to vector<2x18xf32>
    %93 = arith.negf %92 : vector<2x18xf32>
    %94 = math.exp %93 : vector<2x18xf32>
    %cst_45 = arith.constant 1.000000e+00 : f32
    %95 = vector.broadcast %cst_45 : f32 to vector<2x18xf32>
    %96 = arith.addf %95, %94 : vector<2x18xf32>
    %97 = arith.divf %95, %96 : vector<2x18xf32>
    %98 = vector.extract_strided_slice %91 {offsets = [0, 18], sizes = [2, 6], strides = [1, 1]} : vector<2x24xf32> to vector<2x6xf32>
    %99 = math.tanh %98 : vector<2x6xf32>
    %100 = vector.extract_strided_slice %97 {offsets = [0, 0], sizes = [2, 6], strides = [1, 1]} : vector<2x18xf32> to vector<2x6xf32>
    %101 = vector.extract_strided_slice %97 {offsets = [0, 6], sizes = [2, 6], strides = [1, 1]} : vector<2x18xf32> to vector<2x6xf32>
    %102 = vector.extract_strided_slice %97 {offsets = [0, 12], sizes = [2, 6], strides = [1, 1]} : vector<2x18xf32> to vector<2x6xf32>
    %103 = arith.mulf %101, %82 : vector<2x6xf32>
    %104 = arith.mulf %100, %99 : vector<2x6xf32>
    %105 = arith.addf %103, %104 : vector<2x6xf32>
    %106 = math.tanh %105 : vector<2x6xf32>
    %107 = arith.mulf %102, %106 : vector<2x6xf32>
    %108 = arith.index_cast %87 : i32 to index
    %c0_46 = arith.constant 0 : index
    %109 = vector.load %arg14[%108, %c0_46] : memref<16x6xf32, #tpu.memory_space<vmem>>, vector<2x6xf32>
    tpu.vector_store %arg14[%108, %c0_46], %107 {strides = array<i32>} : memref<16x6xf32, #tpu.memory_space<vmem>>, vector<2x6xf32>,
    %c4_i32 = arith.constant 4 : i32
    %c2_i32_47 = arith.constant 2 : i32
    %110 = arith.muli %c4_i32, %c2_i32_47 : i32
    %111 = arith.index_cast %110 : i32 to index
    %c0_48 = arith.constant 0 : index
    %112 = vector.load %arg13[%111, %c0_48] : memref<16x24xf32, #tpu.memory_space<vmem>>, vector<2x24xf32>
    %cst_49 = arith.constant dense<0.000000e+00> : vector<2x24xf32>
    %113 = tpu.matmul %107, %0, %cst_49 {dimension_numbers = #tpu.dot_dimension_numbers<[1], [0], [0], [1], [0, 0, 1, 1], [], []>} : vector<2x6xf32>, vector<6x24xf32>, vector<2x24xf32> -> vector<2x24xf32>
    %114 = arith.addf %112, %113 : vector<2x24xf32>
    %115 = vector.extract_strided_slice %114 {offsets = [0, 0], sizes = [2, 18], strides = [1, 1]} : vector<2x24xf32> to vector<2x18xf32>
    %116 = arith.negf %115 : vector<2x18xf32>
    %117 = math.exp %116 : vector<2x18xf32>
    %cst_50 = arith.constant 1.000000e+00 : f32
    %118 = vector.broadcast %cst_50 : f32 to vector<2x18xf32>
    %119 = arith.addf %118, %117 : vector<2x18xf32>
    %120 = arith.divf %118, %119 : vector<2x18xf32>
    %121 = vector.extract_strided_slice %114 {offsets = [0, 18], sizes = [2, 6], strides = [1, 1]} : vector<2x24xf32> to vector<2x6xf32>
    %122 = math.tanh %121 : vector<2x6xf32>
    %123 = vector.extract_strided_slice %120 {offsets = [0, 0], sizes = [2, 6], strides = [1, 1]} : vector<2x18xf32> to vector<2x6xf32>
    %124 = vector.extract_strided_slice %120 {offsets = [0, 6], sizes = [2, 6], strides = [1, 1]} : vector<2x18xf32> to vector<2x6xf32>
    %125 = vector.extract_strided_slice %120 {offsets = [0, 12], sizes = [2, 6], strides = [1, 1]} : vector<2x18xf32> to vector<2x6xf32>
    %126 = arith.mulf %124, %105 : vector<2x6xf32>
    %127 = arith.mulf %123, %122 : vector<2x6xf32>
    %128 = arith.addf %126, %127 : vector<2x6xf32>
    %129 = math.tanh %128 : vector<2x6xf32>
    %130 = arith.mulf %125, %129 : vector<2x6xf32>
    %131 = arith.index_cast %110 : i32 to index
    %c0_51 = arith.constant 0 : index
    %132 = vector.load %arg14[%131, %c0_51] : memref<16x6xf32, #tpu.memory_space<vmem>>, vector<2x6xf32>
    tpu.vector_store %arg14[%131, %c0_51], %130 {strides = array<i32>} : memref<16x6xf32, #tpu.memory_space<vmem>>, vector<2x6xf32>,
    %c5_i32 = arith.constant 5 : i32
    %c2_i32_52 = arith.constant 2 : i32
    %133 = arith.muli %c5_i32, %c2_i32_52 : i32
    %134 = arith.index_cast %133 : i32 to index
    %c0_53 = arith.constant 0 : index
    %135 = vector.load %arg13[%134, %c0_53] : memref<16x24xf32, #tpu.memory_space<vmem>>, vector<2x24xf32>
    %cst_54 = arith.constant dense<0.000000e+00> : vector<2x24xf32>
    %136 = tpu.matmul %130, %0, %cst_54 {dimension_numbers = #tpu.dot_dimension_numbers<[1], [0], [0], [1], [0, 0, 1, 1], [], []>} : vector<2x6xf32>, vector<6x24xf32>, vector<2x24xf32> -> vector<2x24xf32>
    %137 = arith.addf %135, %136 : vector<2x24xf32>
    %138 = vector.extract_strided_slice %137 {offsets = [0, 0], sizes = [2, 18], strides = [1, 1]} : vector<2x24xf32> to vector<2x18xf32>
    %139 = arith.negf %138 : vector<2x18xf32>
    %140 = math.exp %139 : vector<2x18xf32>
    %cst_55 = arith.constant 1.000000e+00 : f32
    %141 = vector.broadcast %cst_55 : f32 to vector<2x18xf32>
    %142 = arith.addf %141, %140 : vector<2x18xf32>
    %143 = arith.divf %141, %142 : vector<2x18xf32>
    %144 = vector.extract_strided_slice %137 {offsets = [0, 18], sizes = [2, 6], strides = [1, 1]} : vector<2x24xf32> to vector<2x6xf32>
    %145 = math.tanh %144 : vector<2x6xf32>
    %146 = vector.extract_strided_slice %143 {offsets = [0, 0], sizes = [2, 6], strides = [1, 1]} : vector<2x18xf32> to vector<2x6xf32>
    %147 = vector.extract_strided_slice %143 {offsets = [0, 6], sizes = [2, 6], strides = [1, 1]} : vector<2x18xf32> to vector<2x6xf32>
    %148 = vector.extract_strided_slice %143 {offsets = [0, 12], sizes = [2, 6], strides = [1, 1]} : vector<2x18xf32> to vector<2x6xf32>
    %149 = arith.mulf %147, %128 : vector<2x6xf32>
    %150 = arith.mulf %146, %145 : vector<2x6xf32>
    %151 = arith.addf %149, %150 : vector<2x6xf32>
    %152 = math.tanh %151 : vector<2x6xf32>
    %153 = arith.mulf %148, %152 : vector<2x6xf32>
    %154 = arith.index_cast %133 : i32 to index
    %c0_56 = arith.constant 0 : index
    %155 = vector.load %arg14[%154, %c0_56] : memref<16x6xf32, #tpu.memory_space<vmem>>, vector<2x6xf32>
    tpu.vector_store %arg14[%154, %c0_56], %153 {strides = array<i32>} : memref<16x6xf32, #tpu.memory_space<vmem>>, vector<2x6xf32>,
    %c6_i32 = arith.constant 6 : i32
    %c2_i32_57 = arith.constant 2 : i32
    %156 = arith.muli %c6_i32, %c2_i32_57 : i32
    %157 = arith.index_cast %156 : i32 to index
    %c0_58 = arith.constant 0 : index
    %158 = vector.load %arg13[%157, %c0_58] : memref<16x24xf32, #tpu.memory_space<vmem>>, vector<2x24xf32>
    %cst_59 = arith.constant dense<0.000000e+00> : vector<2x24xf32>
    %159 = tpu.matmul %153, %0, %cst_59 {dimension_numbers = #tpu.dot_dimension_numbers<[1], [0], [0], [1], [0, 0, 1, 1], [], []>} : vector<2x6xf32>, vector<6x24xf32>, vector<2x24xf32> -> vector<2x24xf32>
    %160 = arith.addf %158, %159 : vector<2x24xf32>
    %161 = vector.extract_strided_slice %160 {offsets = [0, 0], sizes = [2, 18], strides = [1, 1]} : vector<2x24xf32> to vector<2x18xf32>
    %162 = arith.negf %161 : vector<2x18xf32>
    %163 = math.exp %162 : vector<2x18xf32>
    %cst_60 = arith.constant 1.000000e+00 : f32
    %164 = vector.broadcast %cst_60 : f32 to vector<2x18xf32>
    %165 = arith.addf %164, %163 : vector<2x18xf32>
    %166 = arith.divf %164, %165 : vector<2x18xf32>
    %167 = vector.extract_strided_slice %160 {offsets = [0, 18], sizes = [2, 6], strides = [1, 1]} : vector<2x24xf32> to vector<2x6xf32>
    %168 = math.tanh %167 : vector<2x6xf32>
    %169 = vector.extract_strided_slice %166 {offsets = [0, 0], sizes = [2, 6], strides = [1, 1]} : vector<2x18xf32> to vector<2x6xf32>
    %170 = vector.extract_strided_slice %166 {offsets = [0, 6], sizes = [2, 6], strides = [1, 1]} : vector<2x18xf32> to vector<2x6xf32>
    %171 = vector.extract_strided_slice %166 {offsets = [0, 12], sizes = [2, 6], strides = [1, 1]} : vector<2x18xf32> to vector<2x6xf32>
    %172 = arith.mulf %170, %151 : vector<2x6xf32>
    %173 = arith.mulf %169, %168 : vector<2x6xf32>
    %174 = arith.addf %172, %173 : vector<2x6xf32>
    %175 = math.tanh %174 : vector<2x6xf32>
    %176 = arith.mulf %171, %175 : vector<2x6xf32>
    %177 = arith.index_cast %156 : i32 to index
    %c0_61 = arith.constant 0 : index
    %178 = vector.load %arg14[%177, %c0_61] : memref<16x6xf32, #tpu.memory_space<vmem>>, vector<2x6xf32>
    tpu.vector_store %arg14[%177, %c0_61], %176 {strides = array<i32>} : memref<16x6xf32, #tpu.memory_space<vmem>>, vector<2x6xf32>,
    %c7_i32 = arith.constant 7 : i32
    %c2_i32_62 = arith.constant 2 : i32
    %179 = arith.muli %c7_i32, %c2_i32_62 : i32
    %180 = arith.index_cast %179 : i32 to index
    %c0_63 = arith.constant 0 : index
    %181 = vector.load %arg13[%180, %c0_63] : memref<16x24xf32, #tpu.memory_space<vmem>>, vector<2x24xf32>
    %cst_64 = arith.constant dense<0.000000e+00> : vector<2x24xf32>
    %182 = tpu.matmul %176, %0, %cst_64 {dimension_numbers = #tpu.dot_dimension_numbers<[1], [0], [0], [1], [0, 0, 1, 1], [], []>} : vector<2x6xf32>, vector<6x24xf32>, vector<2x24xf32> -> vector<2x24xf32>
    %183 = arith.addf %181, %182 : vector<2x24xf32>
    %184 = vector.extract_strided_slice %183 {offsets = [0, 0], sizes = [2, 18], strides = [1, 1]} : vector<2x24xf32> to vector<2x18xf32>
    %185 = arith.negf %184 : vector<2x18xf32>
    %186 = math.exp %185 : vector<2x18xf32>
    %cst_65 = arith.constant 1.000000e+00 : f32
    %187 = vector.broadcast %cst_65 : f32 to vector<2x18xf32>
    %188 = arith.addf %187, %186 : vector<2x18xf32>
    %189 = arith.divf %187, %188 : vector<2x18xf32>
    %190 = vector.extract_strided_slice %183 {offsets = [0, 18], sizes = [2, 6], strides = [1, 1]} : vector<2x24xf32> to vector<2x6xf32>
    %191 = math.tanh %190 : vector<2x6xf32>
    %192 = vector.extract_strided_slice %189 {offsets = [0, 0], sizes = [2, 6], strides = [1, 1]} : vector<2x18xf32> to vector<2x6xf32>
    %193 = vector.extract_strided_slice %189 {offsets = [0, 6], sizes = [2, 6], strides = [1, 1]} : vector<2x18xf32> to vector<2x6xf32>
    %194 = vector.extract_strided_slice %189 {offsets = [0, 12], sizes = [2, 6], strides = [1, 1]} : vector<2x18xf32> to vector<2x6xf32>
    %195 = arith.mulf %193, %174 : vector<2x6xf32>
    %196 = arith.mulf %192, %191 : vector<2x6xf32>
    %197 = arith.addf %195, %196 : vector<2x6xf32>
    %198 = math.tanh %197 : vector<2x6xf32>
    %199 = arith.mulf %194, %198 : vector<2x6xf32>
    %200 = arith.index_cast %179 : i32 to index
    %c0_66 = arith.constant 0 : index
    %201 = vector.load %arg14[%200, %c0_66] : memref<16x6xf32, #tpu.memory_space<vmem>>, vector<2x6xf32>
    tpu.vector_store %arg14[%200, %c0_66], %199 {strides = array<i32>} : memref<16x6xf32, #tpu.memory_space<vmem>>, vector<2x6xf32>,
    %c8_i32 = arith.constant 8 : i32
    %c0_67 = arith.constant 0 : index
    %c0_68 = arith.constant 0 : index
    %202 = vector.load %arg14[%c0_67, %c0_68] : memref<16x6xf32, #tpu.memory_space<vmem>>, vector<16x6xf32>
    %cst_69 = arith.constant dense<0.000000e+00> : vector<16x6xf32>
    %203 = tpu.matmul %202, %1, %cst_69 {dimension_numbers = #tpu.dot_dimension_numbers<[1], [0], [0], [1], [0, 0, 1, 1], [], []>} : vector<16x6xf32>, vector<6x6xf32>, vector<16x6xf32> -> vector<16x6xf32>
    %204 = vector.broadcast %2 : vector<1x6xf32> to vector<16x6xf32>
    %205 = arith.addf %203, %204 : vector<16x6xf32>
    %206 = arith.negf %205 : vector<16x6xf32>
    %207 = math.exp %206 : vector<16x6xf32>
    %cst_70 = arith.constant 1.000000e+00 : f32
    %208 = vector.broadcast %cst_70 : f32 to vector<16x6xf32>
    %209 = arith.addf %208, %207 : vector<16x6xf32>
    %210 = arith.divf %208, %209 : vector<16x6xf32>
    %211 = arith.mulf %210, %202 : vector<16x6xf32>
    %cst_71 = arith.constant dense<0.000000e+00> : vector<16x6xf32>
    %212 = tpu.matmul %211, %3, %cst_71 {dimension_numbers = #tpu.dot_dimension_numbers<[1], [0], [0], [1], [0, 0, 1, 1], [], []>} : vector<16x6xf32>, vector<6x6xf32>, vector<16x6xf32> -> vector<16x6xf32>
    %213 = vector.broadcast %4 : vector<1x6xf32> to vector<16x6xf32>
    %214 = arith.addf %212, %213 : vector<16x6xf32>
    %cst_72 = arith.constant dense<0.000000e+00> : vector<16x7xf32>
    %215 = tpu.matmul %214, %5, %cst_72 {dimension_numbers = #tpu.dot_dimension_numbers<[1], [0], [0], [1], [0, 0, 1, 1], [], []>} : vector<16x6xf32>, vector<6x7xf32>, vector<16x7xf32> -> vector<16x7xf32>
    %216 = vector.broadcast %6 : vector<1x7xf32> to vector<16x7xf32>
    %217 = arith.addf %215, %216 : vector<16x7xf32>
    %cst_73 = arith.constant 0.000000e+00 : f32
    %218 = vector.broadcast %cst_73 : f32 to vector<16x7xf32>
    %219 = arith.maximumf %217, %218 : vector<16x7xf32>
    %cst_74 = arith.constant dense<0.000000e+00> : vector<16x1xf32>
    %220 = tpu.matmul %219, %7, %cst_74 {dimension_numbers = #tpu.dot_dimension_numbers<[1], [0], [0], [1], [0, 0, 1, 1], [], []>} : vector<16x7xf32>, vector<7x1xf32>, vector<16x1xf32> -> vector<16x1xf32>
    %221 = vector.broadcast %8 : vector<1x1xf32> to vector<16x1xf32>
    %222 = arith.addf %220, %221 : vector<16x1xf32>
    %c0_75 = arith.constant 0 : index
    %c0_76 = arith.constant 0 : index
    %223 = vector.load %arg12[%c0_75, %c0_76] : memref<16x1xf32, #tpu.memory_space<vmem>>, vector<16x1xf32>
    tpu.vector_store %arg12[%c0_75, %c0_76], %222 {strides = array<i32>} : memref<16x1xf32, #tpu.memory_space<vmem>>, vector<16x1xf32>,
    return
  }
}

</mosaic_0001>

<bundles_post_ra>
// kernel: xlstm_forward.1
= control target key start
LH: loop header
LB: loop body
LE: loop exit
PB: predicated region body
PF: predicated region fallthrough
CT: control target
= control target key end

     0   :  { %vm66_vm0 = vcmask 1040384   ;;  %vm59_vm1 = vcmask 7168   ;;  %vm101_vm2 = vcmask 1045504   ;;  %v944_v3 = vmov 0.0   ;;  %s945_s27 = smov 110   ;;  %s947_s28 = smov 116   ;;  %s1158_s1 = inlined_call_operand.vmem [shape: f32[1,24], index: 1, kind: input, shape index: {}]   ;;  %s1159_s0 = inlined_call_operand.vmem [shape: f32[16,1], index: 0, kind: input, shape index: {}]   ;;  %s1160_s2 = inlined_call_operand.vmem [shape: f32[6,24], index: 2, kind: input, shape index: {}]   ;;  %s1161_s3 = inlined_call_operand.vmem [shape: f32[1,24], index: 3, kind: input, shape index: {}]   ;;  %s1162_s4 = inlined_call_operand.vmem [shape: f32[6,6], index: 4, kind: input, shape index: {}]   ;;  %s1163_s5 = inlined_call_operand.vmem [shape: f32[1,6], index: 5, kind: input, shape index: {}]   ;;  %s1164_s6 = inlined_call_operand.vmem [shape: f32[6,6], index: 6, kind: input, shape index: {}]   ;;  %s1165_s7 = inlined_call_operand.vmem [shape: f32[1,6], index: 7, kind: input, shape index: {}]   ;;  %s1166_s8 = inlined_call_operand.vmem [shape: f32[6,7], index: 8, kind: input, shape index: {}]   ;;  %s1167_s9 = inlined_call_operand.vmem [shape: f32[1,7], index: 9, kind: input, shape index: {}]   ;;  %s1168_s10 = inlined_call_operand.vmem [shape: f32[7,1], index: 10, kind: input, shape index: {}]   ;;  %s1169_s11 = inlined_call_operand.<no memory space> [shape: f32[1,1], index: 11, kind: input, shape index: {}]   ;;  %s1170_s12 = inlined_call_operand.vmem [shape: f32[16,1], index: 12, kind: output, shape index: {}]  }
   0x1   :  { %v54_v0 = vld [vmem:[%s1158_s1] sm:$0x1]  ;;  %vm93_vm3 = vcmask 195584   ;;  %vm167_vm8 = vcmask 41984   ;;  %vm97_vm9 = vcmask 48128  }
   0x2   :  { %v52_v1 = vld [vmem:[%s1159_s0] sm:$0xff]  ;;  %823 = vmatpush.msk.msra.mxu0 %vm66_vm0, %v54_v0 }
   0x3   :  { %v43_v2 = vld [vmem:[%s1160_s2] sm:$0x3f]  ;;  %824 = vmatmul.msk.f32.vlgmr.msra.gmra.mxu0 %vm59_vm1, %v52_v1 }
   0x4   :  { %826 = vmatpush.msk.msra.mxu1 %vm101_vm2, %v43_v2  ;;  %828 = vmatpush.msk.msra.mxu2 %vm101_vm2, %v43_v2  ;;  %v1034_v4 = vld [vmem:[%s1161_s3] ss:$0 sm:$0xff]  ;;  %s946_s3 = smov 6  }
   0x5   :  { %121 = vmatmul.f32.vlgmr.msra.gmra.mxu1 %v944_v3  ;;  %831 = vmatpush.msk.msra.mxu3 %vm101_vm2, %v43_v2 }
   0x6   :  { %834 = vmatpush.msk.msrb.mxu1 %vm101_vm2, %v43_v2  ;;  %837 = vmatpush.msk.msrb.mxu2 %vm101_vm2, %v43_v2 }
   0x7   :  { %840 = vmatpush.msk.msrb.mxu3 %vm101_vm2, %v43_v2  ;;  %843 = vmatpush.msk.msrb.mxu0 %vm101_vm2, %v43_v2 }
   0x8   :  { %846 = vmatpush.msk.msra.mxu1 %vm101_vm2, %v43_v2 }
  0x80   :  { %v87_v5 = vpop.f32.mrf.mxu0 }
  0x81   :  { %v88_v6 = vadd.f32 %v1034_v4, %v87_v5 }
  0x82   :  { %v122_v7 = vpop.f32.mrf.mxu1 }
  0x83   :  { %94 = vst.msk [vmem:[#allocation2] sm:$0xff] %vm93_vm3, %v88_v6 }
  0x8a   :  { %v96_v8 = vld [vmem:[#allocation2] sm:$0x3]  ;;  %v169_v33 = vld [vmem:[#allocation2 + $0x2] sm:$0x3]  ;;  %v235_v59 = vld [vmem:[#allocation2 + $0x4] sm:$0x3] }
  0x8b   :  { %v125_v9 = vadd.f32 %v122_v7, %v96_v8 }
  0x8d   :  { %872 = vtanh.f32 %v125_v9  ;;  %v827_v11 = vmul.f32 -1.442695, %v125_v9 }
  0x8f   :  { %874 = vpow2.f32 %v827_v11 }
  0x93   :  { %v873_v10 = vpop.eup %872 }
  0x94   :  { %148 = vrot.lane.b32.xlu0 %v873_v10, %s945_s27 }
  0x95   :  { %v875_v12 = vpop.eup %874 }
  0x96   :  { %v129_v13 = vadd.f32 1.0, %v875_v12 }
  0x98   :  { %876 = vrcp.f32 %v129_v13  ;;  %v141_v19 = vand.u32 2147483648, %v129_v13  ;;  %vm135_vm5 = vweird.f32 %v129_v13  ;;  %v139_v20 = vand.u32 2147483647, %v129_v13 }
  0x9a   :  { %v142_v22 = vor.u32 1.1754944e-38, %v141_v19  ;;  %vm140_vm7 = vcmp.eq.f32.partialorder %v139_v20, 8.507059e+37 }
  0x9e   :  { %v877_v14 = vpop.eup %876 }
  0x9f   :  { %v131_v15 = vmul.f32 %v877_v14, %v129_v13  ;;  %vm136_vm4 = vweird.f32 %v877_v14 }
  0xa0   :  { %vm137_vm6 = vmor %vm135_vm5, %vm136_vm4 }
  0xa1   :  { %v132_v16 = vsub.f32 1.0, %v131_v15 }
  0xa3   :  { %v133_v17 = vmul.f32 %v877_v14, %v132_v16 }
  0xa5   :  { %v134_v18 = vadd.f32 %v877_v14, %v133_v17 }
  0xa7   :  { %v138_v21 = vsel %vm137_vm6, %v877_v14, %v134_v18 }
  0xa8   :  { %v143_v24 = vsel %vm140_vm7, %v142_v22, %v138_v21  ;;  %v301_v22 = vld [vmem:[#allocation2 + $0x6] sm:$0x3] }
  0xa9   :  { %v146_v26 = vmul.f32 0.0, %v143_v24 }
 0x106   :  { %v149_v23 = vpop.permute.xlu0 %148 }
 0x107   :  { %v151_v25 = vmul.f32 %v149_v23, %v143_v24 }
 0x109   :  { %153 = vrot.lane.b32.xlu0 %v151_v25, %s946_s3 }
 0x17b   :  { %v154_v27 = vpop.permute.xlu0 %153 }
 0x17c   :  { %v156_v28 = vadd.f32 %v154_v27, %v146_v26 }
 0x17e   :  { %878 = vtanh.f32 %v156_v28 }
 0x184   :  { %v879_v29 = vpop.eup %878 }
 0x185   :  { %159 = vrot.lane.b32.xlu1 %v879_v29, %s946_s3 }
 0x1f7   :  { %v160_v30 = vpop.permute.xlu1 %159 }
 0x1f8   :  { %v162_v31 = vmul.f32 %v160_v30, %v143_v24 }
 0x1fa   :  { %164 = vrot.lane.b32.xlu1 %v162_v31, %s947_s28 }
 0x26c   :  { %v165_v32 = vpop.permute.xlu1 %164 }
 0x26d   :  { %168 = vst.msk [vmem:[#allocation3] sm:$0x3] %vm167_vm8, %v165_v32  ;;  %829 = vmatmul.msk.f32.vlgmr.msra.gmra.mxu2 %vm97_vm9, %v165_v32 }
 0x2f0   :  { %v189_v34 = vpop.f32.mrf.mxu2 }
 0x2f1   :  { %v192_v35 = vadd.f32 %v189_v34, %v169_v33 }
 0x2f3   :  { %880 = vtanh.f32 %v192_v35  ;;  %v830_v37 = vmul.f32 -1.442695, %v192_v35 }
 0x2f5   :  { %882 = vpow2.f32 %v830_v37 }
 0x2f9   :  { %v881_v36 = vpop.eup %880 }
 0x2fa   :  { %215 = vrot.lane.b32.xlu2 %v881_v36, %s945_s27 }
 0x2fb   :  { %v883_v38 = vpop.eup %882 }
 0x2fc   :  { %v196_v39 = vadd.f32 1.0, %v883_v38 }
 0x2fe   :  { %884 = vrcp.f32 %v196_v39  ;;  %v208_v45 = vand.u32 2147483648, %v196_v39  ;;  %vm202_vm11 = vweird.f32 %v196_v39  ;;  %v206_v46 = vand.u32 2147483647, %v196_v39 }
 0x300   :  { %v209_v48 = vor.u32 1.1754944e-38, %v208_v45  ;;  %vm207_vm13 = vcmp.eq.f32.partialorder %v206_v46, 8.507059e+37  ;;  %v53_v45 = vld [vmem:[%s1159_s0 + $0x8] sm:$0xff] }
 0x301   :  { %825 = vmatmul.msk.f32.gmra.mxu0 %vm59_vm1, %v53_v45 }
 0x304   :  { %v885_v40 = vpop.eup %884 }
 0x305   :  { %v198_v41 = vmul.f32 %v885_v40, %v196_v39  ;;  %vm203_vm10 = vweird.f32 %v885_v40 }
 0x306   :  { %vm204_vm12 = vmor %vm202_vm11, %vm203_vm10 }
 0x307   :  { %v199_v42 = vsub.f32 1.0, %v198_v41 }
 0x309   :  { %v200_v43 = vmul.f32 %v885_v40, %v199_v42 }
 0x30b   :  { %v201_v44 = vadd.f32 %v885_v40, %v200_v43 }
 0x30d   :  { %v205_v47 = vsel %vm204_vm12, %v885_v40, %v201_v44 }
 0x30e   :  { %v210_v50 = vsel %vm207_vm13, %v209_v48, %v205_v47  ;;  %v44_v48 = vld [vmem:[%s1162_s4] sm:$0x3f] }
 0x30f   :  { %v213_v52 = vmul.f32 %v210_v50, %v156_v28  ;;  %849 = vmatpush.msk.msra.mxu2 %vm101_vm2, %v44_v48 }
 0x354   :  { %v216_v49 = vpop.permute.xlu2 %215 }
 0x355   :  { %v218_v51 = vmul.f32 %v216_v49, %v210_v50 }
 0x357   :  { %220 = vrot.lane.b32.xlu2 %v218_v51, %s946_s3 }
 0x37e   :  { %v90_v49 = vpop.f32.mrf.mxu0 }
 0x3b1   :  { %v221_v53 = vpop.permute.xlu2 %220 }
 0x3b2   :  { %v223_v54 = vadd.f32 %v221_v53, %v213_v52 }
 0x3b4   :  { %886 = vtanh.f32 %v223_v54 }
 0x3ba   :  { %v887_v55 = vpop.eup %886 }
 0x3bb   :  { %226 = vrot.lane.b32.xlu0 %v887_v55, %s946_s3 }
 0x42d   :  { %v227_v56 = vpop.permute.xlu0 %226 }
 0x42e   :  { %v229_v57 = vmul.f32 %v227_v56, %v210_v50  ;;  %v91_v50 = vadd.f32 %v1034_v4, %v90_v49 }
 0x430   :  { %231 = vrot.lane.b32.xlu1 %v229_v57, %s947_s28  ;;  %95 = vst.msk [vmem:[#allocation2 + $0x8] sm:$0xff] %vm93_vm3, %v91_v50 }
 0x437   :  { %v367_v53 = vld [vmem:[#allocation2 + $0x8] sm:$0x3] }
 0x4a2   :  { %v232_v58 = vpop.permute.xlu1 %231 }
 0x4a3   :  { %234 = vst.msk [vmem:[#allocation3 + $0x2] sm:$0x3] %vm167_vm8, %v232_v58  ;;  %832 = vmatmul.msk.f32.vlgmr.msra.gmra.mxu3 %vm97_vm9, %v232_v58 }
 0x526   :  { %v255_v60 = vpop.f32.mrf.mxu3 }
 0x527   :  { %v258_v61 = vadd.f32 %v255_v60, %v235_v59 }
 0x529   :  { %888 = vtanh.f32 %v258_v61  ;;  %v833_v63 = vmul.f32 -1.442695, %v258_v61 }
 0x52b   :  { %890 = vpow2.f32 %v833_v63 }
 0x52f   :  { %v889_v62 = vpop.eup %888 }
 0x530   :  { %281 = vrot.lane.b32.xlu2 %v889_v62, %s945_s27 }
 0x531   :  { %v891_v0 = vpop.eup %890 }
 0x532   :  { %v262_v1 = vadd.f32 1.0, %v891_v0 }
 0x534   :  { %892 = vrcp.f32 %v262_v1  ;;  %v274_v8 = vand.u32 2147483648, %v262_v1  ;;  %vm268_vm15 = vweird.f32 %v262_v1  ;;  %v272_v9 = vand.u32 2147483647, %v262_v1 }
 0x536   :  { %v275_v11 = vor.u32 1.1754944e-38, %v274_v8  ;;  %vm273_vm4 = vcmp.eq.f32.partialorder %v272_v9, 8.507059e+37 }
 0x53a   :  { %v893_v2 = vpop.eup %892 }
 0x53b   :  { %v264_v3 = vmul.f32 %v893_v2, %v262_v1  ;;  %vm269_vm14 = vweird.f32 %v893_v2 }
 0x53c   :  { %vm270_vm0 = vmor %vm268_vm15, %vm269_vm14 }
 0x53d   :  { %v265_v5 = vsub.f32 1.0, %v264_v3 }
 0x53f   :  { %v266_v6 = vmul.f32 %v893_v2, %v265_v5 }
 0x541   :  { %v267_v7 = vadd.f32 %v893_v2, %v266_v6 }
 0x543   :  { %v271_v10 = vsel %vm270_vm0, %v893_v2, %v267_v7 }
 0x544   :  { %v276_v13 = vsel %vm273_vm4, %v275_v11, %v271_v10 }
 0x545   :  { %v279_v15 = vmul.f32 %v276_v13, %v223_v54 }
 0x58a   :  { %v282_v12 = vpop.permute.xlu2 %281 }
 0x58b   :  { %v284_v14 = vmul.f32 %v282_v12, %v276_v13 }
 0x58d   :  { %286 = vrot.lane.b32.xlu0 %v284_v14, %s946_s3  ;;  %v1086_v14 = vld [vmem:[%s1163_s5] ss:$0 sm:$0xff] }
 0x5ff   :  { %v287_v16 = vpop.permute.xlu0 %286 }
 0x600   :  { %v289_v17 = vadd.f32 %v287_v16, %v279_v15 }
 0x602   :  { %894 = vtanh.f32 %v289_v17 }
 0x608   :  { %v895_v18 = vpop.eup %894 }
 0x609   :  { %292 = vrot.lane.b32.xlu1 %v895_v18, %s946_s3 }
 0x67b   :  { %v293_v19 = vpop.permute.xlu1 %292 }
 0x67c   :  { %v295_v20 = vmul.f32 %v293_v19, %v276_v13  ;;  %v46_v19 = vld [vmem:[%s1164_s6] sm:$0x3f] }
 0x67d   :  { %854 = vmatpush.msk.msra.mxu3 %vm101_vm2, %v46_v19 }
 0x67e   :  { %297 = vrot.lane.b32.xlu2 %v295_v20, %s947_s28 }
 0x6d8   :  { %v298_v21 = vpop.permute.xlu2 %297 }
 0x6d9   :  { %300 = vst.msk [vmem:[#allocation3 + $0x4] sm:$0x3] %vm167_vm8, %v298_v21  ;;  %835 = vmatmul.msk.f32.vlgmr.msrb.gmra.mxu1 %vm97_vm9, %v298_v21 }
 0x756   :  { %v321_v23 = vpop.f32.mrf.mxu1 }
 0x757   :  { %v324_v24 = vadd.f32 %v321_v23, %v301_v22 }
 0x759   :  { %896 = vtanh.f32 %v324_v24  ;;  %v836_v26 = vmul.f32 -1.442695, %v324_v24 }
 0x75b   :  { %898 = vpow2.f32 %v836_v26 }
 0x75f   :  { %v897_v25 = vpop.eup %896 }
 0x760   :  { %347 = vrot.lane.b32.xlu0 %v897_v25, %s945_s27 }
 0x761   :  { %v899_v27 = vpop.eup %898 }
 0x762   :  { %v328_v28 = vadd.f32 1.0, %v899_v27 }
 0x764   :  { %900 = vrcp.f32 %v328_v28  ;;  %v340_v34 = vand.u32 2147483648, %v328_v28  ;;  %vm334_vm6 = vweird.f32 %v328_v28  ;;  %v338_v35 = vand.u32 2147483647, %v328_v28 }
 0x766   :  { %v341_v37 = vor.u32 1.1754944e-38, %v340_v34  ;;  %vm339_vm10 = vcmp.eq.f32.partialorder %v338_v35, 8.507059e+37 }
 0x76a   :  { %v901_v29 = vpop.eup %900 }
 0x76b   :  { %v330_v30 = vmul.f32 %v901_v29, %v328_v28  ;;  %vm335_vm5 = vweird.f32 %v901_v29 }
 0x76c   :  { %vm336_vm7 = vmor %vm334_vm6, %vm335_vm5 }
 0x76d   :  { %v331_v31 = vsub.f32 1.0, %v330_v30 }
 0x76f   :  { %v332_v32 = vmul.f32 %v901_v29, %v331_v31 }
 0x771   :  { %v333_v33 = vadd.f32 %v901_v29, %v332_v32 }
 0x773   :  { %v337_v36 = vsel %vm336_vm7, %v901_v29, %v333_v33  ;;  %v433_v33 = vld [vmem:[#allocation2 + $0xa] sm:$0x3] }
 0x774   :  { %v342_v39 = vsel %vm339_vm10, %v341_v37, %v337_v36 }
 0x775   :  { %v345_v41 = vmul.f32 %v342_v39, %v289_v17 }
 0x7d2   :  { %v348_v38 = vpop.permute.xlu0 %347 }
 0x7d3   :  { %v350_v40 = vmul.f32 %v348_v38, %v342_v39 }
 0x7d5   :  { %352 = vrot.lane.b32.xlu1 %v350_v40, %s946_s3 }
 0x847   :  { %v353_v42 = vpop.permute.xlu1 %352 }
 0x848   :  { %v355_v43 = vadd.f32 %v353_v42, %v345_v41 }
 0x84a   :  { %902 = vtanh.f32 %v355_v43 }
 0x850   :  { %v903_v44 = vpop.eup %902 }
 0x851   :  { %358 = vrot.lane.b32.xlu2 %v903_v44, %s946_s3 }
 0x8ab   :  { %v359_v46 = vpop.permute.xlu2 %358 }
 0x8ac   :  { %v361_v47 = vmul.f32 %v359_v46, %v342_v39 }
 0x8ae   :  { %363 = vrot.lane.b32.xlu0 %v361_v47, %s947_s28 }
 0x920   :  { %v364_v51 = vpop.permute.xlu0 %363 }
 0x921   :  { %366 = vst.msk [vmem:[#allocation3 + $0x6] sm:$0x3] %vm167_vm8, %v364_v51  ;;  %838 = vmatmul.msk.f32.vlgmr.msrb.gmra.mxu2 %vm97_vm9, %v364_v51 }
 0x928   :  { %v1072_v52 = vld [vmem:[#allocation3] sm:$0xff] }
 0x929   :  { %850 = vmatmul.msk.f32.vlgmr.msra.gmra.mxu2 %vm97_vm9, %v1072_v52 }
 0x9a4   :  { %v387_v54 = vpop.f32.mrf.mxu2 }
 0x9a5   :  { %v390_v55 = vadd.f32 %v387_v54, %v367_v53 }
 0x9a7   :  { %904 = vtanh.f32 %v390_v55  ;;  %v839_v4 = vmul.f32 -1.442695, %v390_v55 }
 0x9a9   :  { %906 = vpow2.f32 %v839_v4 }
 0x9ac   :  { %v662_v15 = vpop.f32.mrf.mxu2 }
 0x9ad   :  { %v905_v56 = vpop.eup %904  ;;  %v663_v16 = vadd.f32 %v1086_v14, %v662_v15 }
 0x9ae   :  { %413 = vrot.lane.b32.xlu1 %v905_v56, %s945_s27 }
 0x9af   :  { %v907_v57 = vpop.eup %906  ;;  %v852_v17 = vmul.f32 -1.442695, %v663_v16 }
 0x9b0   :  { %v394_v58 = vadd.f32 1.0, %v907_v57  ;;  %v48_v57 = vld [vmem:[%s1166_s8] sm:$0x3f] }
 0x9b1   :  { %857 = vmatpush.msk.msra.mxu0 %vm101_vm2, %v48_v57 }
 0x9b2   :  { %908 = vrcp.f32 %v394_v58  ;;  %v406_v0 = vand.u32 2147483648, %v394_v58  ;;  %vm400_vm11 = vweird.f32 %v394_v58  ;;  %v404_v1 = vand.u32 2147483647, %v394_v58 }
 0x9b4   :  { %v407_v3 = vor.u32 1.1754944e-38, %v406_v0  ;;  %vm405_vm13 = vcmp.eq.f32.partialorder %v404_v1, 8.507059e+37 }
 0x9b8   :  { %v909_v59 = vpop.eup %908 }
 0x9b9   :  { %v396_v60 = vmul.f32 %v909_v59, %v394_v58  ;;  %vm401_vm3 = vweird.f32 %v909_v59 }
 0x9ba   :  { %vm402_vm12 = vmor %vm400_vm11, %vm401_vm3 }
 0x9bb   :  { %v397_v61 = vsub.f32 1.0, %v396_v60 }
 0x9bd   :  { %v398_v62 = vmul.f32 %v909_v59, %v397_v61 }
 0x9bf   :  { %v399_v63 = vadd.f32 %v909_v59, %v398_v62  ;;  %v499_v62 = vld [vmem:[#allocation2 + $0xc] sm:$0x3] }
 0x9c1   :  { %v403_v2 = vsel %vm402_vm12, %v909_v59, %v399_v63  ;;  %v1111_v59 = vld [vmem:[%s1165_s7] ss:$0 sm:$0xff] }
 0x9c2   :  { %v408_v6 = vsel %vm405_vm13, %v407_v3, %v403_v2  ;;  %vm790_vm13 = vcmask 1046528  }
 0x9c3   :  { %v411_v8 = vmul.f32 %v408_v6, %v355_v43 }
 0xa20   :  { %v414_v5 = vpop.permute.xlu1 %413 }
 0xa21   :  { %v416_v7 = vmul.f32 %v414_v5, %v408_v6 }
 0xa23   :  { %418 = vrot.lane.b32.xlu2 %v416_v7, %s946_s3 }
 0xa7d   :  { %v419_v9 = vpop.permute.xlu2 %418 }
 0xa7e   :  { %v1078_v10 = vadd.f32 %v419_v9, %v411_v8 }
 0xa80   :  { %910 = vtanh.f32 %v1078_v10 }
 0xa81   :  { %912 = vpow2.f32 %v852_v17 }
 0xa86   :  { %v911_v11 = vpop.eup %910 }
 0xa87   :  { %424 = vrot.lane.b32.xlu0 %v911_v11, %s946_s3  ;;  %v913_v18 = vpop.eup %912 }
 0xa88   :  { %v674_v20 = vadd.f32 1.0, %v913_v18 }
 0xa8a   :  { %914 = vrcp.f32 %v674_v20  ;;  %v687_v26 = vand.u32 2147483648, %v674_v20  ;;  %vm681_vm15 = vweird.f32 %v674_v20  ;;  %v685_v27 = vand.u32 2147483647, %v674_v20 }
 0xa8c   :  { %v688_v30 = vor.u32 1.1754944e-38, %v687_v26  ;;  %vm686_vm4 = vcmp.eq.f32.partialorder %v685_v27, 8.507059e+37  ;;  %v1125_v26 = vld [vmem:[%s1167_s9] ss:$0 sm:$0xff] }
 0xa90   :  { %v915_v21 = vpop.eup %914 }
 0xa91   :  { %v677_v22 = vmul.f32 %v915_v21, %v674_v20  ;;  %vm682_vm14 = vweird.f32 %v915_v21 }
 0xa92   :  { %vm683_vm0 = vmor %vm681_vm15, %vm682_vm14  ;;  %vm783_vm14 = vcmask 56320  }
 0xa93   :  { %v678_v23 = vsub.f32 1.0, %v677_v22 }
 0xa95   :  { %v679_v24 = vmul.f32 %v915_v21, %v678_v23 }
 0xa97   :  { %v680_v25 = vadd.f32 %v915_v21, %v679_v24 }
 0xa99   :  { %v684_v29 = vsel %vm683_vm0, %v915_v21, %v680_v25  ;;  %v50_v25 = vld [vmem:[%s1168_s10] sm:$0x7f] }
 0xa9a   :  { %v689_v31 = vsel %vm686_vm4, %v688_v30, %v684_v29  ;;  %860 = vmatpush.msk.msrb.mxu1 %vm790_vm13, %v50_v25 }
 0xa9b   :  { %v706_v32 = vmul.f32 %v689_v31, %v1072_v52  ;;  %v17_v31 = vstv %s1169_s11 }
 0xa9c   :  { %18 = vst [vmem:[#allocation4] sm:$0x1] %v17_v31 }
 0xaf9   :  { %v425_v12 = vpop.permute.xlu0 %424 }
 0xafa   :  { %v427_v13 = vmul.f32 %v425_v12, %v408_v6 }
 0xafc   :  { %429 = vrot.lane.b32.xlu1 %v427_v13, %s947_s28 }
 0xb6e   :  { %v430_v28 = vpop.permute.xlu1 %429 }
 0xb6f   :  { %432 = vst.msk [vmem:[#allocation3 + $0x8] sm:$0x3] %vm167_vm8, %v430_v28  ;;  %841 = vmatmul.msk.f32.vlgmr.msrb.gmra.mxu3 %vm97_vm9, %v430_v28 }
 0xb77   :  { %855 = vmatmul.msk.f32.vlgmr.msra.gmra.mxu3 %vm97_vm9, %v706_v32  ;;  %v565_v32 = vld [vmem:[#allocation2 + $0xe] sm:$0x3] }
 0xbf2   :  { %v453_v34 = vpop.f32.mrf.mxu3 }
 0xbf3   :  { %v456_v35 = vadd.f32 %v453_v34, %v433_v33 }
 0xbf5   :  { %916 = vtanh.f32 %v456_v35  ;;  %v842_v37 = vmul.f32 -1.442695, %v456_v35  ;;  %v1134_v35 = vld [vmem:[#allocation4] ss:$0 sm:$0xff] }
 0xbf7   :  { %918 = vpow2.f32 %v842_v37 }
 0xbfa   :  { %v737_v60 = vpop.f32.mrf.mxu3 }
 0xbfb   :  { %v917_v36 = vpop.eup %916  ;;  %v738_v61 = vadd.f32 %v1111_v59, %v737_v60 }
 0xbfc   :  { %479 = vrot.lane.b32.xlu2 %v917_v36, %s945_s27 }
 0xbfd   :  { %v919_v38 = vpop.eup %918 }
 0xbfe   :  { %v460_v39 = vadd.f32 1.0, %v919_v38 }
 0xc00   :  { %920 = vrcp.f32 %v460_v39  ;;  %v472_v45 = vand.u32 2147483648, %v460_v39  ;;  %vm466_vm6 = vweird.f32 %v460_v39  ;;  %v470_v46 = vand.u32 2147483647, %v460_v39 }
 0xc02   :  { %v473_v48 = vor.u32 1.1754944e-38, %v472_v45  ;;  %vm471_vm10 = vcmp.eq.f32.partialorder %v470_v46, 8.507059e+37 }
 0xc06   :  { %v921_v40 = vpop.eup %920 }
 0xc07   :  { %v462_v41 = vmul.f32 %v921_v40, %v460_v39  ;;  %vm467_vm5 = vweird.f32 %v921_v40 }
 0xc08   :  { %vm468_vm7 = vmor %vm466_vm6, %vm467_vm5 }
 0xc09   :  { %v463_v42 = vsub.f32 1.0, %v462_v41 }
 0xc0b   :  { %v464_v43 = vmul.f32 %v921_v40, %v463_v42 }
 0xc0d   :  { %v465_v44 = vadd.f32 %v921_v40, %v464_v43 }
 0xc0f   :  { %v469_v47 = vsel %vm468_vm7, %v921_v40, %v465_v44 }
 0xc10   :  { %v474_v50 = vsel %vm471_vm10, %v473_v48, %v469_v47 }
 0xc11   :  { %v477_v52 = vmul.f32 %v474_v50, %v1078_v10 }
 0xc56   :  { %v480_v49 = vpop.permute.xlu2 %479 }
 0xc57   :  { %v482_v51 = vmul.f32 %v480_v49, %v474_v50 }
 0xc59   :  { %484 = vrot.lane.b32.xlu0 %v482_v51, %s946_s3 }
 0xccb   :  { %v485_v53 = vpop.permute.xlu0 %484 }
 0xccc   :  { %v487_v54 = vadd.f32 %v485_v53, %v477_v52 }
 0xcce   :  { %922 = vtanh.f32 %v487_v54 }
 0xcd4   :  { %v923_v55 = vpop.eup %922 }
 0xcd5   :  { %490 = vrot.lane.b32.xlu1 %v923_v55, %s946_s3 }
 0xd47   :  { %v491_v56 = vpop.permute.xlu1 %490 }
 0xd48   :  { %v493_v4 = vmul.f32 %v491_v56, %v474_v50 }
 0xd4a   :  { %495 = vrot.lane.b32.xlu2 %v493_v4, %s947_s28 }
 0xda4   :  { %v496_v58 = vpop.permute.xlu2 %495 }
 0xda5   :  { %498 = vst.msk [vmem:[#allocation3 + $0xa] sm:$0x3] %vm167_vm8, %v496_v58  ;;  %844 = vmatmul.msk.f32.vlgmr.msrb.gmra.mxu0 %vm97_vm9, %v496_v58 }
 0xdad   :  { %858 = vmatmul.msk.f32.vlgmr.msra.gmra.mxu0 %vm97_vm9, %v738_v61 }
 0xe22   :  { %v519_v63 = vpop.f32.mrf.mxu0 }
 0xe23   :  { %v522_v0 = vadd.f32 %v519_v63, %v499_v62 }
 0xe25   :  { %924 = vtanh.f32 %v522_v0  ;;  %v845_v2 = vmul.f32 -1.442695, %v522_v0 }
 0xe27   :  { %926 = vpow2.f32 %v845_v2 }
 0xe2a   :  { %v772_v27 = vpop.f32.mrf.mxu0 }
 0xe2b   :  { %v925_v1 = vpop.eup %924  ;;  %v773_v29 = vadd.f32 %v1125_v26, %v772_v27 }
 0xe2c   :  { %545 = vrot.lane.b32.xlu0 %v925_v1, %s945_s27 }
 0xe2d   :  { %v927_v3 = vpop.eup %926  ;;  %v778_v30 = vmax.f32 %v773_v29, 0.0 }
 0xe2e   :  { %v526_v5 = vadd.f32 1.0, %v927_v3 }
 0xe30   :  { %928 = vrcp.f32 %v526_v5  ;;  %v538_v11 = vand.u32 2147483648, %v526_v5  ;;  %vm532_vm3 = vweird.f32 %v526_v5  ;;  %v536_v12 = vand.u32 2147483647, %v526_v5 }
 0xe32   :  { %v539_v15 = vor.u32 1.1754944e-38, %v538_v11  ;;  %vm537_vm12 = vcmp.eq.f32.partialorder %v536_v12, 8.507059e+37 }
 0xe36   :  { %v929_v6 = vpop.eup %928 }
 0xe37   :  { %v528_v7 = vmul.f32 %v929_v6, %v526_v5  ;;  %vm533_vm2 = vweird.f32 %v929_v6 }
 0xe38   :  { %vm534_vm11 = vmor %vm532_vm3, %vm533_vm2 }
 0xe39   :  { %v529_v8 = vsub.f32 1.0, %v528_v7 }
 0xe3b   :  { %v530_v9 = vmul.f32 %v929_v6, %v529_v8 }
 0xe3d   :  { %v531_v10 = vadd.f32 %v929_v6, %v530_v9 }
 0xe3f   :  { %v535_v13 = vsel %vm534_vm11, %v929_v6, %v531_v10 }
 0xe40   :  { %v540_v17 = vsel %vm537_vm12, %v539_v15, %v535_v13 }
 0xe41   :  { %v543_v19 = vmul.f32 %v540_v17, %v487_v54 }
 0xe9e   :  { %v546_v16 = vpop.permute.xlu0 %545 }
 0xe9f   :  { %v548_v18 = vmul.f32 %v546_v16, %v540_v17 }
 0xea1   :  { %550 = vrot.lane.b32.xlu1 %v548_v18, %s946_s3 }
 0xf13   :  { %v551_v20 = vpop.permute.xlu1 %550 }
 0xf14   :  { %v553_v21 = vadd.f32 %v551_v20, %v543_v19 }
 0xf16   :  { %930 = vtanh.f32 %v553_v21 }
 0xf1c   :  { %v931_v22 = vpop.eup %930 }
 0xf1d   :  { %556 = vrot.lane.b32.xlu2 %v931_v22, %s946_s3 }
 0xf77   :  { %v557_v23 = vpop.permute.xlu2 %556 }
 0xf78   :  { %v559_v24 = vmul.f32 %v557_v23, %v540_v17 }
 0xf7a   :  { %561 = vrot.lane.b32.xlu0 %v559_v24, %s947_s28 }
 0xfec   :  { %v562_v28 = vpop.permute.xlu0 %561 }
 0xfed   :  { %564 = vst.msk [vmem:[#allocation3 + $0xc] sm:$0x3] %vm167_vm8, %v562_v28  ;;  %847 = vmatmul.msk.f32.vlgmr.msra.gmra.mxu1 %vm97_vm9, %v562_v28 }
 0xff5   :  { %861 = vmatmul.msk.f32.vlgmr.msrb.gmra.mxu1 %vm783_vm14, %v778_v30 }
0x106a   :  { %v585_v33 = vpop.f32.mrf.mxu1 }
0x106b   :  { %v588_v34 = vadd.f32 %v585_v33, %v565_v32 }
0x106d   :  { %932 = vtanh.f32 %v588_v34  ;;  %v848_v39 = vmul.f32 -1.442695, %v588_v34 }
0x106f   :  { %934 = vpow2.f32 %v848_v39 }
0x1072   :  { %v811_v36 = vpop.f32.mrf.mxu1 }
0x1073   :  { %v933_v37 = vpop.eup %932  ;;  %v812_v38 = vadd.f32 %v1134_v35, %v811_v36 }
0x1074   :  { %611 = vrot.lane.b32.xlu1 %v933_v37, %s945_s27 }
0x1075   :  { %817 = vst.msk [vmem:[%s1170_s12] sm:$0xff] %vm59_vm1, %v812_v38  ;;  %v935_v40 = vpop.eup %934 }
0x1076   :  { %v592_v41 = vadd.f32 1.0, %v935_v40 }
0x1078   :  { %936 = vrcp.f32 %v592_v41  ;;  %v604_v47 = vand.u32 2147483648, %v592_v41  ;;  %vm598_vm0 = vweird.f32 %v592_v41  ;;  %v602_v48 = vand.u32 2147483647, %v592_v41 }
0x107a   :  { %v605_v50 = vor.u32 1.1754944e-38, %v604_v47  ;;  %vm603_vm5 = vcmp.eq.f32.partialorder %v602_v48, 8.507059e+37 }
0x107e   :  { %v937_v42 = vpop.eup %936 }
0x107f   :  { %v594_v43 = vmul.f32 %v937_v42, %v592_v41  ;;  %vm599_vm15 = vweird.f32 %v937_v42 }
0x1080   :  { %vm600_vm4 = vmor %vm598_vm0, %vm599_vm15 }
0x1081   :  { %v595_v44 = vsub.f32 1.0, %v594_v43 }
0x1083   :  { %v596_v45 = vmul.f32 %v937_v42, %v595_v44 }
0x1085   :  { %v597_v46 = vadd.f32 %v937_v42, %v596_v45 }
0x1087   :  { %v601_v49 = vsel %vm600_vm4, %v937_v42, %v597_v46 }
0x1088   :  { %v606_v52 = vsel %vm603_vm5, %v605_v50, %v601_v49 }
0x1089   :  { %v609_v54 = vmul.f32 %v606_v52, %v553_v21 }
0x10e6   :  { %v612_v51 = vpop.permute.xlu1 %611 }
0x10e7   :  { %v614_v53 = vmul.f32 %v612_v51, %v606_v52 }
0x10e9   :  { %616 = vrot.lane.b32.xlu2 %v614_v53, %s946_s3 }
0x1143   :  { %v617_v55 = vpop.permute.xlu2 %616 }
0x1144   :  { %v619_v56 = vadd.f32 %v617_v55, %v609_v54 }
0x1146   :  { %938 = vtanh.f32 %v619_v56 }
0x114c   :  { %v939_v4 = vpop.eup %938 }
0x114d   :  { %622 = vrot.lane.b32.xlu0 %v939_v4, %s946_s3 }
0x11bf   :  { %v623_v57 = vpop.permute.xlu0 %622 }
0x11c0   :  { %v625_v58 = vmul.f32 %v623_v57, %v606_v52 }
0x11c2   :  { %627 = vrot.lane.b32.xlu1 %v625_v58, %s947_s28 }
0x1234   :  { %v628_v60 = vpop.permute.xlu1 %627 }
0x1235   :  { %630 = vst.msk [vmem:[#allocation3 + $0xe] sm:$0x3] %vm167_vm8, %v628_v60 }
0x123c   :  { %v632_v61 = vld [vmem:[#allocation3 + $0x8] sm:$0xff] }
0x123d   :  { %851 = vmatmul.msk.f32.gmra.mxu2 %vm97_vm9, %v632_v61 }
0x12c0   :  { %v665_v62 = vpop.f32.mrf.mxu2 }
0x12c1   :  { %v666_v63 = vadd.f32 %v1086_v14, %v665_v62 }
0x12c3   :  { %v853_v0 = vmul.f32 -1.442695, %v666_v63 }
0x12c5   :  { %940 = vpow2.f32 %v853_v0 }
0x12cb   :  { %v941_v1 = vpop.eup %940 }
0x12cc   :  { %v675_v2 = vadd.f32 1.0, %v941_v1 }
0x12ce   :  { %942 = vrcp.f32 %v675_v2  ;;  %v702_v7 = vand.u32 2147483648, %v675_v2  ;;  %v700_v9 = vand.u32 2147483647, %v675_v2  ;;  %vm696_vm8 = vweird.f32 %v675_v2 }
0x12d0   :  { %v703_v11 = vor.u32 1.1754944e-38, %v702_v7  ;;  %vm701_vm10 = vcmp.eq.f32.partialorder %v700_v9, 8.507059e+37 }
0x12d4   :  { %v943_v3 = vpop.eup %942 }
0x12d5   :  { %v692_v5 = vmul.f32 %v943_v3, %v675_v2  ;;  %vm697_vm6 = vweird.f32 %v943_v3 }
0x12d6   :  { %vm698_vm7 = vmor %vm696_vm8, %vm697_vm6 }
0x12d7   :  { %v693_v6 = vsub.f32 1.0, %v692_v5 }
0x12d9   :  { %v694_v8 = vmul.f32 %v943_v3, %v693_v6 }
0x12db   :  { %v695_v10 = vadd.f32 %v943_v3, %v694_v8 }
0x12dd   :  { %v699_v12 = vsel %vm698_vm7, %v943_v3, %v695_v10 }
0x12de   :  { %v704_v13 = vsel %vm701_vm10, %v703_v11, %v699_v12 }
0x12df   :  { %v707_v14 = vmul.f32 %v704_v13, %v632_v61 }
0x12e1   :  { %856 = vmatmul.msk.f32.gmra.mxu3 %vm97_vm9, %v707_v14 }
0x1364   :  { %v740_v15 = vpop.f32.mrf.mxu3 }
0x1365   :  { %v741_v16 = vadd.f32 %v1111_v59, %v740_v15 }
0x1367   :  { %859 = vmatmul.msk.f32.gmra.mxu0 %vm97_vm9, %v741_v16 }
0x13e4   :  { %v775_v17 = vpop.f32.mrf.mxu0 }
0x13e5   :  { %v776_v18 = vadd.f32 %v1125_v26, %v775_v17 }
0x13e7   :  { %v779_v19 = vmax.f32 %v776_v18, 0.0 }
0x13e9   :  { %862 = vmatmul.msk.f32.gmra.mxu1 %vm783_vm14, %v779_v19 }
0x1466   :  { %v814_v20 = vpop.f32.mrf.mxu1 }
0x1467   :  { %v815_v21 = vadd.f32 %v1134_v35, %v814_v20 }
0x1469   :  { %818 = vst.msk [vmem:[%s1170_s12 + $0x8] sm:$0xff] %vm59_vm1, %v815_v21 }

</bundles_post_ra>
